<compile_context>
chip_gen: v7x
topology: tpu7x:2x2x1
jax: 0.10.0
libtpu: 0.0.40
codegen_flags: <defaults>
</compile_context>

<pallas_src>
import math

import jax
import jax.numpy as jnp
from jax.experimental import pallas as pl
from jax.experimental.pallas import tpu as pltpu


# ----------------------------------------------------------------------------
# helpers
# ----------------------------------------------------------------------------
def _round_up(x, m):
    return ((x + m - 1) // m) * m


def _round_down(x, m):
    return (x // m) * m


def _vmem_capacity_bytes():
    """Physical per-core VMEM; fall back to the smallest generation (v7x, 64 MiB)."""
    try:
        info = pltpu.get_tpu_info()
        cap = int(getattr(info, "vmem_capacity_bytes", 0))
        if cap > 0:
            return cap
    except Exception:
        pass
    return 64 * 1024 * 1024


def _padded_2d_bytes(rows, cols, itemsize):
    """VMEM footprint of a 2-D tile including (8, 128) layout padding."""
    return _round_up(max(rows, 1), 8) * _round_up(max(cols, 1), 128) * itemsize


def _choose_batch_tile(B, d_in, d_out, widths, x_itemsize, out_itemsize,
                       resident_param_bytes, vmem_capacity):
    """Largest MXU-friendly batch tile whose (lane-padded) streamed buffers plus
    live activations fit the VMEM budget left over after resident params."""
    if B <= 128:
        return B                                    # single full-extent tile

    def lane(d):                                    # dims < 128 still occupy 128 lanes
        return _round_up(max(d, 1), 128)

    max_w = max([lane(w) for w in widths] + [lane(d_in), lane(d_out)])
    per_row = (3 * x_itemsize * lane(d_in)          # x tile, up to 3 pipeline buffers
               + 2 * out_itemsize * lane(d_out)     # out tile, 2 buffers
               + 3 * 4 * max_w)                     # live f32 activations / staging
    budget = max(int(vmem_capacity * 0.4) - resident_param_bytes,
                 4 * 1024 * 1024)
    tile = min(budget // max(per_row, 1), 2048, B)
    # keep >= 2 (roughly balanced) grid steps so megacore sharding / the input
    # pipeline actually engage
    tile = min(tile, _round_up(pl.cdiv(B, 2), 128))
    # MXU-friendly, lane-dense alignment (tile is the lane dim of the
    # transposed output block, so it must stay a multiple of 128)
    tile = _round_down(tile, 256) if tile >= 256 else 128
    return int(tile)


# ----------------------------------------------------------------------------
# kernel
# ----------------------------------------------------------------------------
def _make_mlp_kernel(n_layers, relu_flags, transpose_out):
    """Builds kernel(x_ref, w0, b0, ..., w_{L-1}, b_{L-1}, out_ref)."""

    def kernel(x_ref, *refs):
        out_ref = refs[-1]
        h = x_ref[...]                                    # (TB, d_in), matmul dtype
        for i in range(n_layers):
            w = refs[2 * i][...]                          # (d_i, d_{i+1}), matmul dtype
            b = refs[2 * i + 1][...]                      # (1,  d_{i+1}), f32
            acc = jnp.dot(h, w, preferred_element_type=jnp.float32) + b
            if relu_flags[i]:
                acc = jnp.maximum(acc, 0.0)
            # TODO(synk): training-mode dropout would mask `acc` here.
            # Cast back to the matmul dtype for the next layer's MXU pass.
            h = acc if i + 1 == n_layers else acc.astype(w.dtype)
        if transpose_out:
            h = h.T                                       # lane-dense (d_out, TB) store
        out_ref[...] = h.astype(out_ref.dtype)

    return kernel


# ----------------------------------------------------------------------------
# wrapper
# ----------------------------------------------------------------------------
def mlp_forward(x, weights, biases, relu_flags, *, compute_dtype=jnp.bfloat16,
                batch_tile=None):
    """out = Head(ReLU(... ReLU(x @ W0 + b0) ...) @ Wh + bh)   (eval-mode MLP)

    weights[i]: (d_i, d_{i+1})  (already transposed vs. torch.nn.Linear.weight)
    biases[i]:  (d_{i+1},)
    relu_flags[i]: apply ReLU after layer i (True for blocks, False for head).
    """
    B, d_in = x.shape
    assert len(weights) == len(biases) == len(relu_flags) >= 1
    n_layers = len(weights)
    d_out = weights[-1].shape[1]
    widths = [w.shape[1] for w in weights]
    out_dtype = x.dtype

    compute_dtype = jnp.dtype(compute_dtype) if compute_dtype is not None else jnp.dtype(x.dtype)
    x_itemsize = compute_dtype.itemsize
    out_itemsize = jnp.dtype(out_dtype).itemsize

    # Resident parameters: weights in the matmul dtype, biases in f32
    # (bias-add / ReLU stay f32 so elementwise math is exact on v5e too).
    flat_params = []
    resident_param_bytes = 0
    for w, b in zip(weights, biases):
        di, do = w.shape
        flat_params.append(jnp.asarray(w, compute_dtype))
        flat_params.append(jnp.asarray(b, jnp.float32).reshape(1, do))
        resident_param_bytes += _padded_2d_bytes(di, do, x_itemsize)
        resident_param_bytes += _padded_2d_bytes(1, do, 4)

    vmem_cap = _vmem_capacity_bytes()
    if batch_tile is None:
        batch_tile = _choose_batch_tile(B, d_in, d_out, widths, x_itemsize,
                                        out_itemsize, resident_param_bytes,
                                        vmem_cap)
    batch_tile = int(min(batch_tile, B))
    n_tiles = pl.cdiv(B, batch_tile)          # ragged last block: Pallas masks it

    # Lane-dense output layout for narrow heads (d_out < 128): store the
    # transposed (d_out, batch_tile) block; transpose back in the wrapper
    # (tiny array), so the in-kernel store is a full 128-lane-multiple vst.
    transpose_out = d_out < 128
    if transpose_out:
        out_shape = jax.ShapeDtypeStruct((d_out, B), out_dtype)
        out_block, out_map = (d_out, batch_tile), (lambda i: (0, i))
    else:
        out_shape = jax.ShapeDtypeStruct((B, d_out), out_dtype)
        out_block, out_map = (batch_tile, d_out), (lambda i: (i, 0))

    kernel = _make_mlp_kernel(n_layers, tuple(bool(r) for r in relu_flags),
                              transpose_out)

    # bf16 x stream: halves HBM bytes for f32 inputs (no-op if already bf16).
    x_c = x.astype(compute_dtype)

    vmem_limit = int(min(vmem_cap // 2, 64 * 1024 * 1024))
    flops = 2 * B * sum(w.shape[0] * w.shape[1] for w in weights)
    bytes_accessed = (B * d_in * x_itemsize + B * d_out * out_itemsize
                      + sum(int(p.size) * p.dtype.itemsize for p in flat_params))
    cost = pl.CostEstimate(flops=int(flops), transcendentals=0,
                           bytes_accessed=int(bytes_accessed))

    def build(use_pipeline_hints):
        narrow = max(widths + [d_in]) <= 512
        if use_pipeline_hints and narrow and n_tiles > 1:
            x_spec = pl.BlockSpec((batch_tile, d_in), lambda i: (i, 0),
                                  pipeline_mode=pl.Buffered(3))
        else:
            x_spec = pl.BlockSpec((batch_tile, d_in), lambda i: (i, 0))
        in_specs = [x_spec]
        for w in weights:
            di, do = w.shape
            if use_pipeline_hints:
                # grid-invariant blocks: fetched once, no need to double-buffer
                in_specs.append(pl.BlockSpec((di, do), lambda i: (0, 0),
                                             pipeline_mode=pl.Buffered(1)))
                in_specs.append(pl.BlockSpec((1, do), lambda i: (0, 0),
                                             pipeline_mode=pl.Buffered(1)))
            else:
                in_specs.append(pl.BlockSpec((di, do), lambda i: (0, 0)))
                in_specs.append(pl.BlockSpec((1, do), lambda i: (0, 0)))
        return pl.pallas_call(
            kernel,
            out_shape=out_shape,
            grid_spec=pltpu.PrefetchScalarGridSpec(
                num_scalar_prefetch=0,
                grid=(n_tiles,),
                in_specs=in_specs,
                out_specs=pl.BlockSpec(out_block, out_map),
            ),
            compiler_params=pltpu.CompilerParams(
                dimension_semantics=("parallel",),   # megacore-shard the batch grid
                vmem_limit_bytes=vmem_limit,
            ),
            cost_estimate=cost,
        )

    try:
        out = build(use_pipeline_hints=True)(x_c, *flat_params)
    except Exception:
        # pipeline_mode hints are a pure optimization; fall back to the default
        # double-buffered pipeline if this jax/Mosaic build rejects them.
        out = build(use_pipeline_hints=False)(x_c, *flat_params)

    return out.T if transpose_out else out


# ----------------------------------------------------------------------------
# parameter construction + reference (for the self-test)
# ----------------------------------------------------------------------------
def make_baseline_params(key, d_in, d_out, n_blocks, d_layer):
    """Deterministic parameters mirroring MLP.make_baseline (ReLU blocks + Head).

    Weight init follows nn.Linear's U(-1/sqrt(fan_in), 1/sqrt(fan_in)); weights
    are stored as (fan_in, fan_out) so the kernel computes x @ W directly.
    """
    dims = [d_in] + [d_layer] * n_blocks
    weights, biases, relu_flags = [], [], []
    for i in range(n_blocks):
        key, kw, kb = jax.random.split(key, 3)
        bound = 1.0 / math.sqrt(dims[i])
        weights.append(jax.random.uniform(
            kw, (dims[i], dims[i + 1]), jnp.float32, -bound, bound))
        biases.append(jax.random.uniform(
            kb, (dims[i + 1],), jnp.float32, -bound, bound))
        relu_flags.append(True)
    if d_out is not None:
        key, kw, kb = jax.random.split(key, 3)
        bound = 1.0 / math.sqrt(dims[-1])
        weights.append(jax.random.uniform(
            kw, (dims[-1], d_out), jnp.float32, -bound, bound))
        biases.append(jax.random.uniform(
            kb, (d_out,), jnp.float32, -bound, bound))
        relu_flags.append(False)
    return weights, biases, relu_flags


def mlp_reference(x, weights, biases, relu_flags, compute_dtype=None):
    """Pure-JAX reference. With compute_dtype set it mimics the kernel's
    mixed-precision path (matmul inputs cast, f32 accumulation / elementwise)."""
    cd = jnp.dtype(compute_dtype) if compute_dtype is not None else jnp.dtype(x.dtype)
    n = len(weights)
    h = x.astype(cd)
    for i, (w, b, r) in enumerate(zip(weights, biases, relu_flags)):
        acc = jnp.dot(h, w.astype(cd),
                      preferred_element_type=jnp.float32) + b.astype(jnp.float32)
        if r:
            acc = jnp.maximum(acc, 0.0)
        h = acc if i + 1 == n else acc.astype(cd)
    return h.astype(x.dtype)


if __name__ == "__main__":
    key = jax.random.PRNGKey(0)
    k_x, k_p = jax.random.split(key)

    # Small shapes consistent with the module: x is (n_objects, n_features).
    n_objects, d_in, n_blocks, d_layer, d_out = 8, 4, 2, 32, 1

    x = jax.random.normal(k_x, (n_objects, d_in), jnp.float32)
    weights, biases, relu_flags = make_baseline_params(
        k_p, d_in=d_in, d_out=d_out, n_blocks=n_blocks, d_layer=d_layer)

    y = mlp_forward(x, weights, biases, relu_flags)   # bf16 MXU path by default
    y = jax.block_until_ready(y)

    ref_mixed = mlp_reference(x, weights, biases, relu_flags,
                              compute_dtype=jnp.bfloat16)
    ref_f32 = mlp_reference(x, weights, biases, relu_flags)

    assert y.shape == (n_objects, d_out)
    assert jnp.allclose(y, ref_mixed, atol=1e-4, rtol=1e-3), (
        float(jnp.max(jnp.abs(y - ref_mixed))))
    assert jnp.allclose(y, ref_f32, atol=5e-2, rtol=5e-2), (
        float(jnp.max(jnp.abs(y - ref_f32))))

    print("KERNEL_OK")
</pallas_src>

<mosaic_0001>
module attributes {stable_mosaic.version = 11 : i64} {
  func.func @kernel(%arg0: i32, %arg1: memref<8x4xbf16, #tpu.memory_space<vmem>>, %arg2: memref<4x32xbf16, #tpu.memory_space<vmem>>, %arg3: memref<1x32xf32, #tpu.memory_space<vmem>>, %arg4: memref<32x32xbf16, #tpu.memory_space<vmem>>, %arg5: memref<1x32xf32, #tpu.memory_space<vmem>>, %arg6: memref<32x1xbf16, #tpu.memory_space<vmem>>, %arg7: memref<1x1xf32, #tpu.memory_space<vmem>>, %arg8: memref<1x8xf32, #tpu.memory_space<vmem>>) attributes {dimension_semantics = [#tpu.dimension_semantics<parallel>], iteration_bounds = array<i64: 1>, scalar_prefetch = 0 : i64, scratch_operands = 0 : i64, tpu.core_type = #tpu.core_type<tc>, window_params = [{transform_indices = @transform_0, window_bounds = array<i64: 8, 4>}, {pipeline_mode = #tpu.pipeline_mode<synchronous>, transform_indices = @transform_1, window_bounds = array<i64: 4, 32>}, {pipeline_mode = #tpu.pipeline_mode<synchronous>, transform_indices = @transform_2, window_bounds = array<i64: 1, 32>}, {pipeline_mode = #tpu.pipeline_mode<synchronous>, transform_indices = @transform_3, window_bounds = array<i64: 32, 32>}, {pipeline_mode = #tpu.pipeline_mode<synchronous>, transform_indices = @transform_4, window_bounds = array<i64: 1, 32>}, {pipeline_mode = #tpu.pipeline_mode<synchronous>, transform_indices = @transform_5, window_bounds = array<i64: 32, 1>}, {pipeline_mode = #tpu.pipeline_mode<synchronous>, transform_indices = @transform_6, window_bounds = array<i64: 1, 1>}, {transform_indices = @transform_7, window_bounds = array<i64: 1, 8>}]} {
    %c0 = arith.constant 0 : index
    %c0_0 = arith.constant 0 : index
    %0 = vector.load %arg1[%c0, %c0_0] : memref<8x4xbf16, #tpu.memory_space<vmem>>, vector<8x4xbf16>
    %c0_1 = arith.constant 0 : index
    %c0_2 = arith.constant 0 : index
    %1 = vector.load %arg2[%c0_1, %c0_2] : memref<4x32xbf16, #tpu.memory_space<vmem>>, vector<4x32xbf16>
    %c0_3 = arith.constant 0 : index
    %c0_4 = arith.constant 0 : index
    %2 = vector.load %arg3[%c0_3, %c0_4] : memref<1x32xf32, #tpu.memory_space<vmem>>, vector<1x32xf32>
    %cst = arith.constant dense<0.000000e+00> : vector<8x32xf32>
    %3 = tpu.matmul %0, %1, %cst {dimension_numbers = #tpu.dot_dimension_numbers<[1], [0], [0], [1], [0, 0, 1, 1], [], []>} : vector<8x4xbf16>, vector<4x32xbf16>, vector<8x32xf32> -> vector<8x32xf32>
    %4 = vector.broadcast %2 : vector<1x32xf32> to vector<8x32xf32>
    %5 = arith.addf %3, %4 : vector<8x32xf32>
    %cst_5 = arith.constant 0.000000e+00 : f32
    %6 = vector.broadcast %cst_5 : f32 to vector<8x32xf32>
    %7 = arith.maximumf %5, %6 : vector<8x32xf32>
    %8 = arith.truncf %7 : vector<8x32xf32> to vector<8x32xbf16>
    %c0_6 = arith.constant 0 : index
    %c0_7 = arith.constant 0 : index
    %9 = vector.load %arg4[%c0_6, %c0_7] : memref<32x32xbf16, #tpu.memory_space<vmem>>, vector<32x32xbf16>
    %c0_8 = arith.constant 0 : index
    %c0_9 = arith.constant 0 : index
    %10 = vector.load %arg5[%c0_8, %c0_9] : memref<1x32xf32, #tpu.memory_space<vmem>>, vector<1x32xf32>
    %cst_10 = arith.constant dense<0.000000e+00> : vector<8x32xf32>
    %11 = tpu.matmul %8, %9, %cst_10 {dimension_numbers = #tpu.dot_dimension_numbers<[1], [0], [0], [1], [0, 0, 1, 1], [], []>} : vector<8x32xbf16>, vector<32x32xbf16>, vector<8x32xf32> -> vector<8x32xf32>
    %12 = vector.broadcast %10 : vector<1x32xf32> to vector<8x32xf32>
    %13 = arith.addf %11, %12 : vector<8x32xf32>
    %cst_11 = arith.constant 0.000000e+00 : f32
    %14 = vector.broadcast %cst_11 : f32 to vector<8x32xf32>
    %15 = arith.maximumf %13, %14 : vector<8x32xf32>
    %16 = arith.truncf %15 : vector<8x32xf32> to vector<8x32xbf16>
    %c0_12 = arith.constant 0 : index
    %c0_13 = arith.constant 0 : index
    %17 = vector.load %arg6[%c0_12, %c0_13] : memref<32x1xbf16, #tpu.memory_space<vmem>>, vector<32x1xbf16>
    %c0_14 = arith.constant 0 : index
    %c0_15 = arith.constant 0 : index
    %18 = vector.load %arg7[%c0_14, %c0_15] : memref<1x1xf32, #tpu.memory_space<vmem>>, vector<1x1xf32>
    %cst_16 = arith.constant dense<0.000000e+00> : vector<8x1xf32>
    %19 = tpu.matmul %16, %17, %cst_16 {dimension_numbers = #tpu.dot_dimension_numbers<[1], [0], [0], [1], [0, 0, 1, 1], [], []>} : vector<8x32xbf16>, vector<32x1xbf16>, vector<8x1xf32> -> vector<8x1xf32>
    %20 = vector.broadcast %18 : vector<1x1xf32> to vector<8x1xf32>
    %21 = arith.addf %19, %20 : vector<8x1xf32>
    %22 = tpu.transpose %21, [1, 0] : vector<8x1xf32> -> vector<1x8xf32>
    %c0_17 = arith.constant 0 : index
    %c0_18 = arith.constant 0 : index
    %23 = vector.load %arg8[%c0_17, %c0_18] : memref<1x8xf32, #tpu.memory_space<vmem>>, vector<1x8xf32>
    tpu.vector_store %arg8[%c0_17, %c0_18], %22 {strides = array<i32>} : memref<1x8xf32, #tpu.memory_space<vmem>>, vector<1x8xf32>,
    return
  }
  func.func @transform_0(%arg0: i32) -> (i32, i32) {
    %c0_i32 = arith.constant 0 : i32
    %c0_i32_0 = arith.constant 0 : i32
    return %arg0, %c0_i32 : i32, i32
  }
  func.func @transform_1(%arg0: i32) -> (i32, i32) {
    %c0_i32 = arith.constant 0 : i32
    %c0_i32_0 = arith.constant 0 : i32
    %c0_i32_1 = arith.constant 0 : i32
    return %c0_i32, %c0_i32_0 : i32, i32
  }
  func.func @transform_2(%arg0: i32) -> (i32, i32) {
    %c0_i32 = arith.constant 0 : i32
    %c0_i32_0 = arith.constant 0 : i32
    %c0_i32_1 = arith.constant 0 : i32
    return %c0_i32, %c0_i32_0 : i32, i32
  }
  func.func @transform_3(%arg0: i32) -> (i32, i32) {
    %c0_i32 = arith.constant 0 : i32
    %c0_i32_0 = arith.constant 0 : i32
    %c0_i32_1 = arith.constant 0 : i32
    return %c0_i32, %c0_i32_0 : i32, i32
  }
  func.func @transform_4(%arg0: i32) -> (i32, i32) {
    %c0_i32 = arith.constant 0 : i32
    %c0_i32_0 = arith.constant 0 : i32
    %c0_i32_1 = arith.constant 0 : i32
    return %c0_i32, %c0_i32_0 : i32, i32
  }
  func.func @transform_5(%arg0: i32) -> (i32, i32) {
    %c0_i32 = arith.constant 0 : i32
    %c0_i32_0 = arith.constant 0 : i32
    %c0_i32_1 = arith.constant 0 : i32
    return %c0_i32, %c0_i32_0 : i32, i32
  }
  func.func @transform_6(%arg0: i32) -> (i32, i32) {
    %c0_i32 = arith.constant 0 : i32
    %c0_i32_0 = arith.constant 0 : i32
    %c0_i32_1 = arith.constant 0 : i32
    return %c0_i32, %c0_i32_0 : i32, i32
  }
  func.func @transform_7(%arg0: i32) -> (i32, i32) {
    %c0_i32 = arith.constant 0 : i32
    %c0_i32_0 = arith.constant 0 : i32
    return %c0_i32, %arg0 : i32, i32
  }
}

module attributes {stable_mosaic.version = 11 : i64} {
  func.func @kernel(%arg0: i32, %arg1: memref<8x4xbf16, #tpu.memory_space<vmem>>, %arg2: memref<4x32xbf16, #tpu.memory_space<vmem>>, %arg3: memref<1x32xf32, #tpu.memory_space<vmem>>, %arg4: memref<32x32xbf16, #tpu.memory_space<vmem>>, %arg5: memref<1x32xf32, #tpu.memory_space<vmem>>, %arg6: memref<32x1xbf16, #tpu.memory_space<vmem>>, %arg7: memref<1x1xf32, #tpu.memory_space<vmem>>, %arg8: memref<1x8xf32, #tpu.memory_space<vmem>>) attributes {dimension_semantics = [#tpu.dimension_semantics<parallel>], iteration_bounds = array<i64: 1>, scalar_prefetch = 0 : i64, scratch_operands = 0 : i64, tpu.core_type = #tpu.core_type<tc>, window_params = [{transform_indices = @transform_0, window_bounds = array<i64: 8, 4>}, {pipeline_mode = #tpu.pipeline_mode<synchronous>, transform_indices = @transform_1, window_bounds = array<i64: 4, 32>}, {pipeline_mode = #tpu.pipeline_mode<synchronous>, transform_indices = @transform_2, window_bounds = array<i64: 1, 32>}, {pipeline_mode = #tpu.pipeline_mode<synchronous>, transform_indices = @transform_3, window_bounds = array<i64: 32, 32>}, {pipeline_mode = #tpu.pipeline_mode<synchronous>, transform_indices = @transform_4, window_bounds = array<i64: 1, 32>}, {pipeline_mode = #tpu.pipeline_mode<synchronous>, transform_indices = @transform_5, window_bounds = array<i64: 32, 1>}, {pipeline_mode = #tpu.pipeline_mode<synchronous>, transform_indices = @transform_6, window_bounds = array<i64: 1, 1>}, {transform_indices = @transform_7, window_bounds = array<i64: 1, 8>}]} {
    %c0 = arith.constant 0 : index
    %c0_0 = arith.constant 0 : index
    %0 = vector.load %arg1[%c0, %c0_0] : memref<8x4xbf16, #tpu.memory_space<vmem>>, vector<8x4xbf16>
    %c0_1 = arith.constant 0 : index
    %c0_2 = arith.constant 0 : index
    %1 = vector.load %arg2[%c0_1, %c0_2] : memref<4x32xbf16, #tpu.memory_space<vmem>>, vector<4x32xbf16>
    %c0_3 = arith.constant 0 : index
    %c0_4 = arith.constant 0 : index
    %2 = vector.load %arg3[%c0_3, %c0_4] : memref<1x32xf32, #tpu.memory_space<vmem>>, vector<1x32xf32>
    %cst = arith.constant dense<0.000000e+00> : vector<8x32xf32>
    %3 = tpu.matmul %0, %1, %cst {dimension_numbers = #tpu.dot_dimension_numbers<[1], [0], [0], [1], [0, 0, 1, 1], [], []>} : vector<8x4xbf16>, vector<4x32xbf16>, vector<8x32xf32> -> vector<8x32xf32>
    %4 = vector.broadcast %2 : vector<1x32xf32> to vector<8x32xf32>
    %5 = arith.addf %3, %4 : vector<8x32xf32>
    %cst_5 = arith.constant 0.000000e+00 : f32
    %6 = vector.broadcast %cst_5 : f32 to vector<8x32xf32>
    %7 = arith.maximumf %5, %6 : vector<8x32xf32>
    %8 = arith.truncf %7 : vector<8x32xf32> to vector<8x32xbf16>
    %c0_6 = arith.constant 0 : index
    %c0_7 = arith.constant 0 : index
    %9 = vector.load %arg4[%c0_6, %c0_7] : memref<32x32xbf16, #tpu.memory_space<vmem>>, vector<32x32xbf16>
    %c0_8 = arith.constant 0 : index
    %c0_9 = arith.constant 0 : index
    %10 = vector.load %arg5[%c0_8, %c0_9] : memref<1x32xf32, #tpu.memory_space<vmem>>, vector<1x32xf32>
    %cst_10 = arith.constant dense<0.000000e+00> : vector<8x32xf32>
    %11 = tpu.matmul %8, %9, %cst_10 {dimension_numbers = #tpu.dot_dimension_numbers<[1], [0], [0], [1], [0, 0, 1, 1], [], []>} : vector<8x32xbf16>, vector<32x32xbf16>, vector<8x32xf32> -> vector<8x32xf32>
    %12 = vector.broadcast %10 : vector<1x32xf32> to vector<8x32xf32>
    %13 = arith.addf %11, %12 : vector<8x32xf32>
    %cst_11 = arith.constant 0.000000e+00 : f32
    %14 = vector.broadcast %cst_11 : f32 to vector<8x32xf32>
    %15 = arith.maximumf %13, %14 : vector<8x32xf32>
    %16 = arith.truncf %15 : vector<8x32xf32> to vector<8x32xbf16>
    %c0_12 = arith.constant 0 : index
    %c0_13 = arith.constant 0 : index
    %17 = vector.load %arg6[%c0_12, %c0_13] : memref<32x1xbf16, #tpu.memory_space<vmem>>, vector<32x1xbf16>
    %c0_14 = arith.constant 0 : index
    %c0_15 = arith.constant 0 : index
    %18 = vector.load %arg7[%c0_14, %c0_15] : memref<1x1xf32, #tpu.memory_space<vmem>>, vector<1x1xf32>
    %cst_16 = arith.constant dense<0.000000e+00> : vector<8x1xf32>
    %19 = tpu.matmul %16, %17, %cst_16 {dimension_numbers = #tpu.dot_dimension_numbers<[1], [0], [0], [1], [0, 0, 1, 1], [], []>} : vector<8x32xbf16>, vector<32x1xbf16>, vector<8x1xf32> -> vector<8x1xf32>
    %20 = vector.broadcast %18 : vector<1x1xf32> to vector<8x1xf32>
    %21 = arith.addf %19, %20 : vector<8x1xf32>
    %22 = tpu.transpose %21, [1, 0] : vector<8x1xf32> -> vector<1x8xf32>
    %c0_17 = arith.constant 0 : index
    %c0_18 = arith.constant 0 : index
    %23 = vector.load %arg8[%c0_17, %c0_18] : memref<1x8xf32, #tpu.memory_space<vmem>>, vector<1x8xf32>
    tpu.vector_store %arg8[%c0_17, %c0_18], %22 {strides = array<i32>} : memref<1x8xf32, #tpu.memory_space<vmem>>, vector<1x8xf32>,
    return
  }
  func.func @transform_0(%arg0: i32) -> (i32, i32) {
    %c0_i32 = arith.constant 0 : i32
    %c0_i32_0 = arith.constant 0 : i32
    return %arg0, %c0_i32 : i32, i32
  }
  func.func @transform_1(%arg0: i32) -> (i32, i32) {
    %c0_i32 = arith.constant 0 : i32
    %c0_i32_0 = arith.constant 0 : i32
    %c0_i32_1 = arith.constant 0 : i32
    return %c0_i32, %c0_i32_0 : i32, i32
  }
  func.func @transform_2(%arg0: i32) -> (i32, i32) {
    %c0_i32 = arith.constant 0 : i32
    %c0_i32_0 = arith.constant 0 : i32
    %c0_i32_1 = arith.constant 0 : i32
    return %c0_i32, %c0_i32_0 : i32, i32
  }
  func.func @transform_3(%arg0: i32) -> (i32, i32) {
    %c0_i32 = arith.constant 0 : i32
    %c0_i32_0 = arith.constant 0 : i32
    %c0_i32_1 = arith.constant 0 : i32
    return %c0_i32, %c0_i32_0 : i32, i32
  }
  func.func @transform_4(%arg0: i32) -> (i32, i32) {
    %c0_i32 = arith.constant 0 : i32
    %c0_i32_0 = arith.constant 0 : i32
    %c0_i32_1 = arith.constant 0 : i32
    return %c0_i32, %c0_i32_0 : i32, i32
  }
  func.func @transform_5(%arg0: i32) -> (i32, i32) {
    %c0_i32 = arith.constant 0 : i32
    %c0_i32_0 = arith.constant 0 : i32
    %c0_i32_1 = arith.constant 0 : i32
    return %c0_i32, %c0_i32_0 : i32, i32
  }
  func.func @transform_6(%arg0: i32) -> (i32, i32) {
    %c0_i32 = arith.constant 0 : i32
    %c0_i32_0 = arith.constant 0 : i32
    %c0_i32_1 = arith.constant 0 : i32
    return %c0_i32, %c0_i32_0 : i32, i32
  }
  func.func @transform_7(%arg0: i32) -> (i32, i32) {
    %c0_i32 = arith.constant 0 : i32
    %c0_i32_0 = arith.constant 0 : i32
    return %c0_i32, %arg0 : i32, i32
  }
}

</mosaic_0001>

<bundles_post_ra>
// kernel: tpu_custom_call.1
= control target key start
LH: loop header
LB: loop body
LE: loop exit
PB: predicated region body
PF: predicated region fallthrough
CT: control target
= control target key end

     0   :  { %s425_s0 = inlined_call_operand.vmem [shape: bf16[8,4], index: 0, kind: input, shape index: {}]   ;;  %s426_s1 = inlined_call_operand.vmem [shape: bf16[4,32], index: 1, kind: input, shape index: {}]   ;;  %s427_s2 = inlined_call_operand.vmem [shape: f32[1,32], index: 2, kind: input, shape index: {}]   ;;  %s428_s3 = inlined_call_operand.vmem [shape: bf16[32,32], index: 3, kind: input, shape index: {}]   ;;  %s429_s4 = inlined_call_operand.vmem [shape: f32[1,32], index: 4, kind: input, shape index: {}]   ;;  %s430_s5 = inlined_call_operand.vmem [shape: bf16[32,1], index: 5, kind: input, shape index: {}]   ;;  %s431_s6 = inlined_call_operand.<no memory space> [shape: f32[1,1], index: 6, kind: input, shape index: {}]   ;;  %s432_s7 = inlined_call_operand.hbm [shape: f32[1,8], index: 7, kind: output, shape index: {}]  }
   0x1   :  { %v12_v0 = vstv %s431_s6 }
   0x2   :  { %13 = vst [vmem:[#allocation2] sm:$0x1] %v12_v0 }
   0x3   :  { %v31_v1 = vld [vmem:[%s426_s1] sm:$0x3]  ;;  %vm43_vm0 = vcmask 1041408   ;;  %v343_v2 = vmov 0.0   ;;  %vm344_vm1 = vmmov 0   ;;  %vm39_vm2 = vcmask 31744  }
   0x4   :  { %290 = vmatprep.subr.bf16.mxu0 %v343_v2  ;;  %v45_v3 = vsel %vm43_vm0, %v31_v1, 0  ;;  %292 = vmatprep.mubr.msk.bf16.mxu0 %vm344_vm1, %v343_v2  ;;  %v30_v4 = vld [vmem:[%s425_s0] sm:$0xf] }
   0x5   :  { %291 = vmatpush3.bf16.msra.mxu0 %v45_v3  ;;  %296 = vmatprep.subr.bf16.mxu1 %v343_v2 }
   0x6   :  { %300 = vmatprep.mubr.msk.bf16.mxu1 %vm344_vm1, %v343_v2  ;;  %304 = vmatprep.subr.bf16.mxu0 %v343_v2 }
   0x7   :  { %14 = vsyncpa [#allocation4], 0  ;;  %v315_v5 = vld [vmem:[%s428_s3] sm:$0xff]   ;;  %v316_v6 = vld [vmem:[%s428_s3 + $0x8] sm:$0xff]   ;;  %vm112_vm3 = vcmask 261120   ;;  %vm256_vm4 = vcmask 57344  }
   0x8   :  { %293 = vmatmul.mubr.msk.bf16.vlgmr.msra.gmra.mrb[0].mxu0 %vm39_vm2, %v30_v4  ;;  %297 = vmatpush3.bf16.msra.mxu1 %v315_v5  ;;  %v317_v7 = vld [vmem:[%s430_s5] sm:$0xff]   ;;  %v318_v16 = vld [vmem:[%s430_s5 + $0x8] sm:$0xff]  }
   0x9   :  { %308 = vmatprep.mubr.msk.bf16.mxu0 %vm344_vm1, %v343_v2  ;;  %298 = vmatprep.subr.bf16.mxu1 %v343_v2  ;;  %v272_v8 = vld [vmem:[%s427_s2] ss:$0 sm:$0xff]  ;;  %s345_s2 = smov [#allocation3]  }
   0xa   :  { %305 = vmatpush3.bf16.msra.mxu0 %v317_v7  ;;  %v274_v17 = vld [vmem:[%s429_s4] ss:$0 sm:$0xff]  ;;  %s264_s5 = sshll.u32 %s345_s2, 4  ;;  %s265_s5 = int_to_ptr.vmem [resolvable:$true] %s264_s5 }
   0xb   :  { %306 = vmatprep.subr.bf16.mxu0 %v343_v2  ;;  %v278_v25 = vld [vmem:[#allocation2] ss:$0 sm:$0xff]  ;;  %s319_s4 = scalar_lea.vmem %s265_s5, 16  ;;  %s323_s15 = scalar_lea.vmem %s265_s5, 32 }
   0xc   :  { %299 = vmatpush3.bf16.msra.mxu1 %v316_v6  ;;  %p320_p0 = scmp.ne.s32.totalorder %s265_s5, %s319_s4  ;;  %p324_p1 = scmp.lt.s32.totalorder %s265_s5, %s265_s5 }
   0xd   :  { %p325_p2 = scmp.lt.s32.totalorder %s323_s15, %s319_s4 }
   0xe   :  { %307 = vmatpush3.bf16.msra.mxu0 %v318_v16 }
   0xf   :  { %p326_p3 = por %p325_p2, %p324_p1 }
  0x11   :  { %p327_p4 = pnand %p326_p3, %p320_p0 }
  0xdb   :  { %v81_v9 = vpop.f32.mrb[0].mxu0 }
  0xdc   :  { %v82_v10 = vadd.f32 %v272_v8, %v81_v9  ;;  %v294_v11 = vpop.f32.mrb[1].mxu0 }
  0xdd   :  { %v84_v12 = vpop.f32.mrb[2].mxu0 }
  0xde   :  { %v87_v13 = vmax.f32 %v82_v10, 0.0  ;;  %v295_v14 = vpop.f32.mrb[3].mxu0 }
  0xe0   :  { %v88_v15 = vpack.c.bf16 %v87_v13, %v87_v13 }
  0xe2   :  { %301 = vmatmul.mubr.msk.bf16.vlgmr.msra.gmra.mrb[0].mxu1 %vm112_vm3, %v88_v15 }
 0x1b5   :  { %v150_v18 = vpop.f32.mrb[0].mxu1 }
 0x1b6   :  { %v151_v19 = vadd.f32 %v274_v17, %v150_v18  ;;  %v302_v20 = vpop.f32.mrb[1].mxu1 }
 0x1b7   :  { %v153_v21 = vpop.f32.mrb[2].mxu1 }
 0x1b8   :  { %v156_v22 = vmax.f32 %v151_v19, 0.0  ;;  %v303_v23 = vpop.f32.mrb[3].mxu1 }
 0x1ba   :  { %v157_v24 = vpack.c.bf16 %v156_v22, %v156_v22 }
 0x1bc   :  { %309 = vmatmul.mubr.msk.bf16.vlgmr.msra.gmra.mrb[4].mxu0 %vm112_vm3, %v157_v24 }
 0x28f   :  { %v218_v26 = vpop.f32.mrb[4].mxu0 }
 0x290   :  { %v310_v27 = vpop.f32.mrb[5].mxu0  ;;  %v219_v28 = vadd.f32 %v278_v25, %v218_v26 }
 0x291   :  { %v221_v29 = vpop.f32.mrb[6].mxu0 }
 0x292   :  { %224 = vxpose.xlu0.b32.start.end [1/1] (short) (narrow) %v219_v28, 8  ;;  %v311_v30 = vpop.f32.mrb[7].mxu0 }
 0x312   :  { %v240_v31 = vpop.trf.xlu0 }
 0x313   :  { %257 = vst.msk [vmem:[#allocation3] sm:$0x1] %vm256_vm4, %v240_v31 }
 0x314   :  { %330 = shalt.err (!%p327_p4)
}
 0x315   :  { %s331_s18 = scalar_lea.hbm %s432_s7, 16 }
 0x316   :  { %p332_p5 = scmp.ne.s32.totalorder %s432_s7, %s331_s18  ;;  %p335_p6 = scmp.lt.u32.totalorder %s331_s18, %s432_s7 }
 0x318   :  { %p337_p7 = pnand %p335_p6, %p332_p5 }
 0x31a   :  { %340 = shalt.err (!%p337_p7)
}
 0x31b   :  { %267 = dma.vmem_to_hbm [thread:$0]  %s265_s5, 16, %s432_s7, [#allocation4]  }
 0x31c   :  { %341 = dma.done.wait [#allocation4], 16  }
 0x31d   :  { %342 = vsyncadd [#allocation4], 4294967280 }
 0x31e   :  { %271 = vsyncpa [#allocation4], 1 }

// kernel: tpu_custom_call.1
= control target key start
LH: loop header
LB: loop body
LE: loop exit
PB: predicated region body
PF: predicated region fallthrough
CT: control target
= control target key end

     0   :  { %s425_s0 = inlined_call_operand.vmem [shape: bf16[8,4], index: 0, kind: input, shape index: {}]   ;;  %s426_s1 = inlined_call_operand.vmem [shape: bf16[4,32], index: 1, kind: input, shape index: {}]   ;;  %s427_s2 = inlined_call_operand.vmem [shape: f32[1,32], index: 2, kind: input, shape index: {}]   ;;  %s428_s3 = inlined_call_operand.vmem [shape: bf16[32,32], index: 3, kind: input, shape index: {}]   ;;  %s429_s4 = inlined_call_operand.vmem [shape: f32[1,32], index: 4, kind: input, shape index: {}]   ;;  %s430_s5 = inlined_call_operand.vmem [shape: bf16[32,1], index: 5, kind: input, shape index: {}]   ;;  %s431_s6 = inlined_call_operand.<no memory space> [shape: f32[1,1], index: 6, kind: input, shape index: {}]   ;;  %s432_s7 = inlined_call_operand.hbm [shape: f32[1,8], index: 7, kind: output, shape index: {}]  }
   0x1   :  { %v12_v0 = vstv %s431_s6 }
   0x2   :  { %13 = vst [vmem:[#allocation2] sm:$0x1] %v12_v0 }
   0x3   :  { %v31_v1 = vld [vmem:[%s426_s1] sm:$0x3]  ;;  %vm43_vm0 = vcmask 1041408   ;;  %v343_v2 = vmov 0.0   ;;  %vm344_vm1 = vmmov 0   ;;  %vm39_vm2 = vcmask 31744  }
   0x4   :  { %290 = vmatprep.subr.bf16.mxu0 %v343_v2  ;;  %v45_v3 = vsel %vm43_vm0, %v31_v1, 0  ;;  %292 = vmatprep.mubr.msk.bf16.mxu0 %vm344_vm1, %v343_v2  ;;  %v30_v4 = vld [vmem:[%s425_s0] sm:$0xf] }
   0x5   :  { %291 = vmatpush3.bf16.msra.mxu0 %v45_v3  ;;  %296 = vmatprep.subr.bf16.mxu1 %v343_v2 }
   0x6   :  { %300 = vmatprep.mubr.msk.bf16.mxu1 %vm344_vm1, %v343_v2  ;;  %304 = vmatprep.subr.bf16.mxu0 %v343_v2 }
   0x7   :  { %14 = vsyncpa [#allocation4], 0  ;;  %v315_v5 = vld [vmem:[%s428_s3] sm:$0xff]   ;;  %v316_v6 = vld [vmem:[%s428_s3 + $0x8] sm:$0xff]   ;;  %vm112_vm3 = vcmask 261120   ;;  %vm256_vm4 = vcmask 57344  }
   0x8   :  { %293 = vmatmul.mubr.msk.bf16.vlgmr.msra.gmra.mrb[0].mxu0 %vm39_vm2, %v30_v4  ;;  %297 = vmatpush3.bf16.msra.mxu1 %v315_v5  ;;  %v317_v7 = vld [vmem:[%s430_s5] sm:$0xff]   ;;  %v318_v16 = vld [vmem:[%s430_s5 + $0x8] sm:$0xff]  }
   0x9   :  { %308 = vmatprep.mubr.msk.bf16.mxu0 %vm344_vm1, %v343_v2  ;;  %298 = vmatprep.subr.bf16.mxu1 %v343_v2  ;;  %v272_v8 = vld [vmem:[%s427_s2] ss:$0 sm:$0xff]  ;;  %s345_s2 = smov [#allocation3]  }
   0xa   :  { %305 = vmatpush3.bf16.msra.mxu0 %v317_v7  ;;  %v274_v17 = vld [vmem:[%s429_s4] ss:$0 sm:$0xff]  ;;  %s264_s5 = sshll.u32 %s345_s2, 4  ;;  %s265_s5 = int_to_ptr.vmem [resolvable:$true] %s264_s5 }
   0xb   :  { %306 = vmatprep.subr.bf16.mxu0 %v343_v2  ;;  %v278_v25 = vld [vmem:[#allocation2] ss:$0 sm:$0xff]  ;;  %s319_s4 = scalar_lea.vmem %s265_s5, 16  ;;  %s323_s15 = scalar_lea.vmem %s265_s5, 32 }
   0xc   :  { %299 = vmatpush3.bf16.msra.mxu1 %v316_v6  ;;  %p320_p0 = scmp.ne.s32.totalorder %s265_s5, %s319_s4  ;;  %p324_p1 = scmp.lt.s32.totalorder %s265_s5, %s265_s5 }
   0xd   :  { %p325_p2 = scmp.lt.s32.totalorder %s323_s15, %s319_s4 }
   0xe   :  { %307 = vmatpush3.bf16.msra.mxu0 %v318_v16 }
   0xf   :  { %p326_p3 = por %p325_p2, %p324_p1 }
  0x11   :  { %p327_p4 = pnand %p326_p3, %p320_p0 }
  0xdb   :  { %v81_v9 = vpop.f32.mrb[0].mxu0 }
  0xdc   :  { %v82_v10 = vadd.f32 %v272_v8, %v81_v9  ;;  %v294_v11 = vpop.f32.mrb[1].mxu0 }
  0xdd   :  { %v84_v12 = vpop.f32.mrb[2].mxu0 }
  0xde   :  { %v87_v13 = vmax.f32 %v82_v10, 0.0  ;;  %v295_v14 = vpop.f32.mrb[3].mxu0 }
  0xe0   :  { %v88_v15 = vpack.c.bf16 %v87_v13, %v87_v13 }
  0xe2   :  { %301 = vmatmul.mubr.msk.bf16.vlgmr.msra.gmra.mrb[0].mxu1 %vm112_vm3, %v88_v15 }
 0x1b5   :  { %v150_v18 = vpop.f32.mrb[0].mxu1 }
 0x1b6   :  { %v151_v19 = vadd.f32 %v274_v17, %v150_v18  ;;  %v302_v20 = vpop.f32.mrb[1].mxu1 }
 0x1b7   :  { %v153_v21 = vpop.f32.mrb[2].mxu1 }
 0x1b8   :  { %v156_v22 = vmax.f32 %v151_v19, 0.0  ;;  %v303_v23 = vpop.f32.mrb[3].mxu1 }
 0x1ba   :  { %v157_v24 = vpack.c.bf16 %v156_v22, %v156_v22 }
 0x1bc   :  { %309 = vmatmul.mubr.msk.bf16.vlgmr.msra.gmra.mrb[4].mxu0 %vm112_vm3, %v157_v24 }
 0x28f   :  { %v218_v26 = vpop.f32.mrb[4].mxu0 }
 0x290   :  { %v310_v27 = vpop.f32.mrb[5].mxu0  ;;  %v219_v28 = vadd.f32 %v278_v25, %v218_v26 }
 0x291   :  { %v221_v29 = vpop.f32.mrb[6].mxu0 }
 0x292   :  { %224 = vxpose.xlu0.b32.start.end [1/1] (short) (narrow) %v219_v28, 8  ;;  %v311_v30 = vpop.f32.mrb[7].mxu0 }
 0x312   :  { %v240_v31 = vpop.trf.xlu0 }
 0x313   :  { %257 = vst.msk [vmem:[#allocation3] sm:$0x1] %vm256_vm4, %v240_v31 }
 0x314   :  { %330 = shalt.err (!%p327_p4)
}
 0x315   :  { %s331_s18 = scalar_lea.hbm %s432_s7, 16 }
 0x316   :  { %p332_p5 = scmp.ne.s32.totalorder %s432_s7, %s331_s18  ;;  %p335_p6 = scmp.lt.u32.totalorder %s331_s18, %s432_s7 }
 0x318   :  { %p337_p7 = pnand %p335_p6, %p332_p5 }
 0x31a   :  { %340 = shalt.err (!%p337_p7)
}
 0x31b   :  { %267 = dma.vmem_to_hbm [thread:$0]  %s265_s5, 16, %s432_s7, [#allocation4]  }
 0x31c   :  { %341 = dma.done.wait [#allocation4], 16  }
 0x31d   :  { %342 = vsyncadd [#allocation4], 4294967280 }
 0x31e   :  { %271 = vsyncpa [#allocation4], 1 }

</bundles_post_ra>
